<compile_context>
chip_gen: v5e
topology: v5e:2x2
jax: 0.10.0
libtpu: 0.0.40
codegen_flags: <defaults>
</compile_context>

<pallas_src>
import functools

import jax
import jax.numpy as jnp
from jax import lax
from jax.experimental import pallas as pl
from jax.experimental.pallas import tpu as pltpu

SCALE = 128.0  # self.s in the PyTorch module


def _row_lse_kernel(x_ref, o_ref, *, n_valid):
    """Writes logsumexp(SCALE * x, axis=-1) for every row of the tile."""
    tile_n = x_ref.shape[0]
    i = pl.program_id(0)

    x = x_ref[...].astype(jnp.float32)                       # (T, C)
    m = jnp.max(x, axis=-1, keepdims=True)                   # (T, 1)
    # exp arguments are SCALE * (x - m) <= 0 -> numerically stable.
    sum_exp = jnp.sum(jnp.exp(SCALE * (x - m)), axis=-1, keepdims=True)
    lse = jnp.log(sum_exp) + SCALE * m                       # (T, 1)

    # Rows past the true batch size come from a masked boundary DMA and hold
    # garbage; they are never written back (out_shape is exactly (N, 1)), but
    # select them to 0 anyway so inf/nan can't reach the store path.
    row_ids = i * tile_n + lax.broadcasted_iota(jnp.int32, lse.shape, 0)
    o_ref[...] = jnp.where(row_ids < n_valid, lse, 0.0)


def _vmem_capacity_bytes() -> int:
    try:
        cap = getattr(pltpu.get_tpu_info(), "vmem_capacity_bytes", None)
        if cap:
            return int(cap)
    except Exception:
        pass
    return 64 << 20  # conservative fallback: v7x per-TensorCore VMEM


def _pick_tile_n(n: int, c: int, itemsize: int) -> int:
    # Per-row working set: double-buffered input rows (2 * itemsize bytes/elem)
    # plus ~3 live (T, C) f32 temporaries inside the kernel (f32 cast, shifted
    # logits, exp result).  Budget half the chip's VMEM, capped at 48 MiB:
    # ~32 MiB of working set on v7x (64 MiB/TC), 48 MiB on v5e/v6e (128 MiB).
    # Bigger tiles amortize the ~0.35us per-grid-step overhead; there is no
    # artificial row cap beyond the byte budget and N.
    budget = min(_vmem_capacity_bytes() // 2, 48 << 20)
    per_row = max(1, c * (2 * itemsize + 3 * 4))
    rows = max(1, budget // per_row)
    sub = 16 if itemsize == 2 else 8          # bf16 packs 16 rows per sublane tile
    tile = min(rows, max(n, 1))
    return max(sub, (tile // sub) * sub)


def cos_loss(inputs: jax.Array, targets: jax.Array) -> jax.Array:
    """inputs: (N, C) float logits; targets: (N,) int class ids. Returns scalar."""
    n, c = inputs.shape
    itemsize = jnp.dtype(inputs.dtype).itemsize
    tile_n = _pick_tile_n(n, c, itemsize)
    grid_n = pl.cdiv(n, tile_n)

    # Explicit VMEM limit: double-buffered input/output blocks + f32 temps.
    used = tile_n * c * (2 * itemsize + 3 * 4) + 4 * tile_n * 4
    vmem_limit = int(min(max(used + (2 << 20), 16 << 20),
                         _vmem_capacity_bytes()))

    kernel = functools.partial(_row_lse_kernel, n_valid=n)

    # TODO(synk): on v7x, verify the "parallel" grid axis actually splits the
    # row tiles across both TensorCores; if not, switch to pltpu.CORE_PARALLEL
    # (or pl.core_map over a 2-core mesh) with an even row-tile split.
    # TODO(synk): on v5e, sweep pipeline_mode=pl.Buffered(3) on the logits
    # BlockSpec if the DMA is still exposed at ~0.8 TB/s HBM.
    # TODO(synk): for very large class counts (C ~ 50k+) add a second
    # "arbitrary" grid axis over C with an online (flash-style) logsumexp.
    row_lse = pl.pallas_call(
        kernel,
        out_shape=jax.ShapeDtypeStruct((n, 1), jnp.float32),
        grid=(grid_n,),
        in_specs=[pl.BlockSpec((tile_n, c), lambda i: (i, 0))],
        out_specs=pl.BlockSpec((tile_n, 1), lambda i: (i, 0)),
        compiler_params=pltpu.CompilerParams(
            dimension_semantics=("parallel",),
            vmem_limit_bytes=vmem_limit,
        ),
        cost_estimate=pl.CostEstimate(
            flops=4 * n * c,
            transcendentals=n * c,
            bytes_accessed=n * c * itemsize + n * 4,
        ),
    )(inputs)[:, 0]

    # O(N) pieces stay in plain JAX: gather the target logit per row (in the
    # native dtype -- no full-tensor f32 cast) and take the mean.  This keeps
    # the kernel's grid axis fully parallel and its inner loop minimal.
    t = targets.astype(jnp.int32)[:, None]
    x_t = jnp.take_along_axis(inputs, t, axis=-1)[:, 0].astype(jnp.float32)
    return jnp.mean(row_lse - SCALE * x_t)


def _reference(inputs, targets):
    # Pure-JAX reference for sanity checking.
    logits = SCALE * inputs.astype(jnp.float32)
    lse = jax.scipy.special.logsumexp(logits, axis=-1)
    tgt = jnp.take_along_axis(logits, targets[:, None].astype(jnp.int32),
                              axis=-1)[:, 0]
    return jnp.mean(lse - tgt)


if __name__ == "__main__":
    key = jax.random.PRNGKey(0)
    k1, k2, k3, k4, k5, k6 = jax.random.split(key, 6)

    # Case 1: small batch of cosine-similarity-like logits (f32).
    N, C = 8, 32
    inputs = jax.random.normal(k1, (N, C), dtype=jnp.float32) * 0.1
    targets = jax.random.randint(k2, (N,), 0, C, dtype=jnp.int32)
    loss = jax.block_until_ready(cos_loss(inputs, targets))
    ref = jax.block_until_ready(_reference(inputs, targets))
    assert jnp.allclose(loss, ref, rtol=1e-5, atol=1e-5), (loss, ref)

    # Case 2: batch not a multiple of the row tile (exercises the masked
    # boundary input DMA + partial output writeback, multi-step grid).
    N2, C2 = 10, 160
    inputs2 = jax.random.normal(k3, (N2, C2), dtype=jnp.float32) * 0.1
    targets2 = jax.random.randint(k4, (N2,), 0, C2, dtype=jnp.int32)
    loss2 = jax.block_until_ready(cos_loss(inputs2, targets2))
    ref2 = jax.block_until_ready(_reference(inputs2, targets2))
    assert jnp.allclose(loss2, ref2, rtol=1e-5, atol=1e-5), (loss2, ref2)

    # Case 3: bf16 inputs (16-row sublane packing path); math stays f32.
    N3, C3 = 24, 256
    inputs3 = (jax.random.normal(k5, (N3, C3), dtype=jnp.float32) * 0.1
               ).astype(jnp.bfloat16)
    targets3 = jax.random.randint(k6, (N3,), 0, C3, dtype=jnp.int32)
    loss3 = jax.block_until_ready(cos_loss(inputs3, targets3))
    ref3 = jax.block_until_ready(_reference(inputs3, targets3))
    assert jnp.allclose(loss3, ref3, rtol=1e-4, atol=1e-4), (loss3, ref3)

    print("KERNEL_OK")
</pallas_src>

<mosaic_0001>
module attributes {stable_mosaic.version = 11 : i64} {
  func.func @_row_lse_kernel(%arg0: i32, %arg1: memref<8x32xf32, #tpu.memory_space<vmem>>, %arg2: memref<8x1xf32, #tpu.memory_space<vmem>>) attributes {dimension_semantics = [#tpu.dimension_semantics<parallel>], iteration_bounds = array<i64: 1>, scalar_prefetch = 0 : i64, scratch_operands = 0 : i64, tpu.core_type = #tpu.core_type<tc>, window_params = [{transform_indices = @transform_0, window_bounds = array<i64: 8, 32>}, {transform_indices = @transform_1, window_bounds = array<i64: 8, 1>}]} {
    %c0 = arith.constant 0 : index
    %c0_0 = arith.constant 0 : index
    %0 = vector.load %arg1[%c0, %c0_0] : memref<8x32xf32, #tpu.memory_space<vmem>>, vector<8x32xf32>
    %cst = arith.constant dense<0xFF800000> : vector<8xf32>
    %1 = vector.multi_reduction <maximumf>, %0, %cst [1] : vector<8x32xf32> to vector<8xf32>
    %2 = vector.shape_cast %1 : vector<8xf32> to vector<8x1xf32>
    %3 = vector.broadcast %2 : vector<8x1xf32> to vector<8x32xf32>
    %4 = arith.subf %0, %3 : vector<8x32xf32>
    %cst_1 = arith.constant 1.280000e+02 : f32
    %5 = vector.broadcast %cst_1 : f32 to vector<8x32xf32>
    %6 = arith.mulf %5, %4 : vector<8x32xf32>
    %7 = math.exp %6 : vector<8x32xf32>
    %cst_2 = arith.constant dense<0.000000e+00> : vector<8xf32>
    %8 = vector.multi_reduction <add>, %7, %cst_2 [1] : vector<8x32xf32> to vector<8xf32>
    %9 = vector.shape_cast %8 : vector<8xf32> to vector<8x1xf32>
    %10 = math.log %9 : vector<8x1xf32>
    %cst_3 = arith.constant 1.280000e+02 : f32
    %11 = vector.broadcast %cst_3 : f32 to vector<8x1xf32>
    %12 = arith.mulf %11, %2 : vector<8x1xf32>
    %13 = arith.addf %10, %12 : vector<8x1xf32>
    %c8_i32 = arith.constant 8 : i32
    %14 = arith.muli %arg0, %c8_i32 : i32
    %15 = tpu.iota {dimensions = array<i32: 0>} : vector<8x1xi32>
    %16 = vector.broadcast %14 : i32 to vector<8x1xi32>
    %17 = arith.addi %16, %15 : vector<8x1xi32>
    %c8_i32_4 = arith.constant 8 : i32
    %18 = vector.broadcast %c8_i32_4 : i32 to vector<8x1xi32>
    %19 = arith.cmpi slt, %17, %18 : vector<8x1xi32>
    %cst_5 = arith.constant 0.000000e+00 : f32
    %20 = vector.broadcast %cst_5 : f32 to vector<8x1xf32>
    %21 = arith.select %19, %13, %20 : vector<8x1xi1>, vector<8x1xf32>
    %c0_6 = arith.constant 0 : index
    %c0_7 = arith.constant 0 : index
    %22 = vector.load %arg2[%c0_6, %c0_7] : memref<8x1xf32, #tpu.memory_space<vmem>>, vector<8x1xf32>
    tpu.vector_store %arg2[%c0_6, %c0_7], %21 {strides = array<i32>} : memref<8x1xf32, #tpu.memory_space<vmem>>, vector<8x1xf32>,
    return
  }
  func.func @transform_0(%arg0: i32) -> (i32, i32) {
    %c0_i32 = arith.constant 0 : i32
    %c0_i32_0 = arith.constant 0 : i32
    return %arg0, %c0_i32 : i32, i32
  }
  func.func @transform_1(%arg0: i32) -> (i32, i32) {
    %c0_i32 = arith.constant 0 : i32
    %c0_i32_0 = arith.constant 0 : i32
    return %arg0, %c0_i32 : i32, i32
  }
}

</mosaic_0001>

<bundles_post_ra>
// kernel: tpu_custom_call.1
= control target key start
LH: loop header
LB: loop body
LE: loop exit
PB: predicated region body
PF: predicated region fallthrough
CT: control target
= control target key end

     0   :  { %6 = vsyncpa [#allocation3], 0  ;;  %s83_s9 = smov [#allocation2]   ;;  %s100_s0 = inlined_call_operand.hbm [shape: f32[8,32], index: 0, kind: input, shape index: {}]   ;;  %s101_s1 = inlined_call_operand.vmem [shape: f32[8,1], index: 1, kind: output, shape index: {}]  }
   0x1   :  { %s12_s8 = sshll.u32 %s100_s0, 4  ;;  %s14_s10 = sshll.u32 %s83_s9, 4  ;;  %s13_s8 = int_to_ptr.hbm [resolvable:$true] %s12_s8  ;;  %s15_s10 = int_to_ptr.vmem [resolvable:$true] %s14_s10 }
   0x2   :  { %17 = dma.hbm_to_vmem [thread:$0]  %s13_s8, 128, %s15_s10, [#allocation3]  }
   0x3   :  { %81 = dma.done.wait [#allocation3], 128  }
   0x4   :  { %82 = vsyncadd [#allocation3], 4294967168  ;;  %vm23_vm0 = vcmask 261120   ;;  %v22_v0 = vld [vmem:[#allocation2] sm:$0xff]  ;;  %vm45_vm1 = vcmask 7168  }
   0x5   :  { %v24_v1 = vsel %vm23_vm0, %v22_v0, -inf }
   0x6   :  { %25 = vmax.xlane.f32.xlu0 %v24_v1 }
  0x79   :  { %v26_v2 = vpop.xlane.xlu0 %25 }
  0x7a   :  { %v27_v3 = vsub.f32 %v22_v0, %v26_v2  ;;  %v36_v10 = vmul.f32 128.0, %v26_v2 }
  0x7c   :  { %v28_v4 = vmul.f32 128.0, %v27_v3 }
  0x7e   :  { %v29_v5 = vmul.f32 1.442695, %v28_v4 }
  0x80   :  { %53 = vpow2.f32 %v29_v5 }
  0x86   :  { %v54_v6 = vpop.eup %53 }
  0x87   :  { %v31_v7 = vsel %vm23_vm0, %v54_v6, 0.0 }
  0x88   :  { %32 = vadd.xlane.f32.xlu0 %v31_v7 }
  0xfb   :  { %v33_v8 = vpop.xlane.xlu0 %32 }
  0xfc   :  { %55 = vlog2.f32 %v33_v8 }
 0x102   :  { %v56_v9 = vpop.eup %55 }
 0x103   :  { %v35_v11 = vmul.f32 0.6931472, %v56_v9 }
 0x105   :  { %v37_v12 = vadd.f32 %v36_v10, %v35_v11 }
 0x107   :  { %46 = vst.msk [vmem:[%s101_s1] sm:$0xff] %vm45_vm1, %v37_v12 }
 0x108   :  { %51 = vsyncpa [#allocation3], 1 }

</bundles_post_ra>
